<compile_context>
chip_gen: v5e
topology: v5e:2x2
jax: 0.10.0
libtpu: 0.0.40
codegen_flags: <defaults>
</compile_context>

<pallas_src>
import functools

import jax
import jax.numpy as jnp
from jax.experimental import pallas as pl
from jax.experimental.pallas import tpu as pltpu


# ----------------------------------------------------------------------------
# Shared math (used by the Pallas kernel body and by the pure-JAX reference).
# ----------------------------------------------------------------------------
def _encoder_layer_math(x2, mask3, params, *, batch, seq, nhead, eps,
                        in_kernel=False):
    """One post-norm TransformerEncoderLayer forward (dropout == identity).

    x2    : (batch*seq, E) float32 activations
    mask3 : (batch, 1, seq) float32 additive key-padding mask (0 valid, -1e30 pad)
    params: pre-transposed / pre-stacked weights (see _prepare_stacked_params):
            (wqkv_t (E,3E) bf16 [Q cols pre-scaled by 1/sqrt(D)], bqkv (1,3E) f32,
             wo_t (E,E) bf16, bo (1,E) f32,
             ln1w (1,E), ln1b (1,E),
             w1_t (E,H) bf16, b1 (1,H),
             w2_t (H,E) bf16, b2 (1,E),
             ln2w (1,E), ln2b (1,E))
    """
    (wqkv_t, bqkv, wo_t, bo, ln1w, ln1b, w1_t, b1, w2_t, b2, ln2w, ln2b) = params

    rows, E = x2.shape
    D = E // nhead
    f32, bf16 = jnp.float32, jnp.bfloat16

    # ---- fused QKV projection: one full-width (rows,E)@(E,3E) MXU matmul ----
    qkv = jnp.dot(x2.astype(bf16), wqkv_t, preferred_element_type=f32) + bqkv

    # ---- gather heads into a single (batch*nhead) batch dimension ----------
    def split_heads(base):
        parts = [qkv[:, base + h * D: base + (h + 1) * D].reshape(batch, seq, D)
                 for h in range(nhead)]
        cat = jnp.concatenate(parts, axis=1)          # (batch, nhead*seq, D)
        return cat.reshape(batch * nhead, seq, D)

    q4 = split_heads(0).astype(bf16)                  # scale already folded in
    k4 = split_heads(E).astype(bf16)
    v4 = split_heads(2 * E).astype(bf16)

    # ---- attention: one batched score matmul, ONE softmax for all heads ----
    scores = jnp.einsum('bqd,bkd->bqk', q4, k4,
                        preferred_element_type=f32)   # (batch*nhead, S, S)
    scores = scores.reshape(batch, nhead * seq, seq) + mask3
    m = jnp.max(scores, axis=-1, keepdims=True)
    p = jnp.exp(scores - m)
    denom = jnp.sum(p, axis=-1, keepdims=True)        # (batch, nhead*seq, 1)
    p4 = p.reshape(batch * nhead, seq, seq).astype(bf16)

    o4 = jnp.einsum('bqk,bkd->bqd', p4, v4,
                    preferred_element_type=f32)       # (batch*nhead, S, D)

    # Deferred softmax normalization on the (S, D)-shaped result.
    if in_kernel:
        inv = pl.reciprocal(denom, approx=True)
    else:
        inv = 1.0 / denom
    o4 = o4 * inv.reshape(batch * nhead, seq, 1)

    # ---- regroup heads into a (rows, E) slab; single (rows,E)@(E,E) matmul --
    o3 = o4.reshape(batch, nhead * seq, D)
    heads = [o3[:, h * seq:(h + 1) * seq, :].reshape(rows, D) for h in range(nhead)]
    o_cat = jnp.concatenate(heads, axis=-1).astype(bf16)       # (rows, E)
    attn = jnp.dot(o_cat, wo_t, preferred_element_type=f32) + bo

    def layernorm(z, w, b):
        mu = jnp.mean(z, axis=-1, keepdims=True)
        var = jnp.mean(jnp.square(z - mu), axis=-1, keepdims=True)
        return (z - mu) * jax.lax.rsqrt(var + eps) * w + b

    # ---- post-norm residual blocks (norm_first=False) -----------------------
    h1 = layernorm(x2 + attn, ln1w, ln1b)

    ff = jnp.dot(h1.astype(bf16), w1_t, preferred_element_type=f32) + b1
    ff = jnp.maximum(ff, 0.0)
    ff = jnp.dot(ff.astype(bf16), w2_t, preferred_element_type=f32) + b2
    return layernorm(h1 + ff, ln2w, ln2b)             # (rows, E) f32


# ----------------------------------------------------------------------------
# Pallas kernel: all layers fused, activation carried in VMEM scratch.
# ----------------------------------------------------------------------------
def fused_encoder_kernel(x_ref, mask_ref,
                         wqkv_ref, bqkv_ref, wo_ref, bo_ref,
                         ln1w_ref, ln1b_ref, w1_ref, b1_ref,
                         w2_ref, b2_ref, ln2w_ref, ln2b_ref,
                         out_ref, x_scratch, *,
                         nhead, eps, weights_resident):
    layer = pl.program_id(1)
    last = pl.num_programs(1) - 1
    bt, S, E = x_ref.shape

    # First layer of this batch block: load the input into the VMEM carry.
    @pl.when(layer == 0)
    def _():
        x_scratch[...] = x_ref[...].reshape(bt * S, E).astype(jnp.float32)

    # Resident: weights live in VMEM as full-L stacks, indexed by layer.
    # Streamed: per-layer (1, ...) blocks auto-pipelined from HBM.
    widx = layer if weights_resident else 0
    params = tuple(r[widx] for r in (wqkv_ref, bqkv_ref, wo_ref, bo_ref,
                                     ln1w_ref, ln1b_ref, w1_ref, b1_ref,
                                     w2_ref, b2_ref, ln2w_ref, ln2b_ref))

    y = _encoder_layer_math(x_scratch[...], mask_ref[...], params,
                            batch=bt, seq=S, nhead=nhead, eps=eps,
                            in_kernel=True)

    # Carry only when another layer will consume it (saves a bt*S*E f32 store).
    @pl.when(layer < last)
    def _():
        x_scratch[...] = y

    # Only the last layer materializes the output block.
    @pl.when(layer == last)
    def _():
        out_ref[...] = y.reshape(bt, S, E).astype(out_ref.dtype)


# ----------------------------------------------------------------------------
# Host-side weight preparation: stack per layer, pre-transpose, cast to bf16,
# fold the 1/sqrt(D) attention scale into the Q projection.
# ----------------------------------------------------------------------------
def _prepare_stacked_params(layer_params, *, nhead):
    E = layer_params[0][0].shape[1]
    D = E // nhead
    scale = 1.0 / float(D) ** 0.5
    q_scale = jnp.concatenate([jnp.full((E,), scale, jnp.float32),
                               jnp.ones((2 * E,), jnp.float32)])

    def stk(fn, idx, dtype=jnp.float32):
        return jnp.stack([fn(p[idx]) for p in layer_params]).astype(dtype)

    ident = lambda a: a
    wqkv_t = stk(lambda w: w.T * q_scale[None, :], 0, jnp.bfloat16)   # (L, E, 3E)
    bqkv = stk(lambda b: b * q_scale[None, :], 1)                     # (L, 1, 3E)
    wo_t = stk(lambda w: w.T, 2, jnp.bfloat16)                        # (L, E, E)
    bo = stk(ident, 3)                                                # (L, 1, E)
    ln1w = stk(ident, 4)
    ln1b = stk(ident, 5)
    w1_t = stk(lambda w: w.T, 6, jnp.bfloat16)                        # (L, E, H)
    b1 = stk(ident, 7)
    w2_t = stk(lambda w: w.T, 8, jnp.bfloat16)                        # (L, H, E)
    b2 = stk(ident, 9)
    ln2w = stk(ident, 10)
    ln2b = stk(ident, 11)
    return (wqkv_t, bqkv, wo_t, bo, ln1w, ln1b, w1_t, b1, w2_t, b2, ln2w, ln2b)


def _weight_bytes(stacked):
    return sum(int(w.size) * w.dtype.itemsize for w in stacked)


def _act_vmem_bytes(bt, S, E, H, nhead):
    """Rough per-step activation VMEM estimate (carry + I/O blocks + temps)."""
    rows = bt * S
    carry = rows * E * 4
    io_blocks = 2 * (rows * E * 4) * 2            # in + out, double-buffered
    mask = bt * S * 4 * 2
    qkv = rows * 3 * E * (4 + 2)                  # f32 qkv + bf16 head copies
    attn_mats = 3 * bt * nhead * S * S * 4        # scores, p, p(bf16) approx
    ffn = rows * H * 4 * 2
    return carry + io_blocks + mask + qkv + attn_mats + ffn


# ----------------------------------------------------------------------------
# Wrapper: single pallas_call, grid = (batch_blocks, num_layers).
# ----------------------------------------------------------------------------
def transformer_aggregator_pallas(tokens, token_mask, layer_params, *, nhead,
                                  eps=1e-5, batch_block=None,
                                  weights_resident=None,
                                  out_dtype=jnp.float32):
    B, S, E = tokens.shape
    L = len(layer_params)
    H = layer_params[0][6].shape[0]
    D = E // nhead

    # ---- batch block selection ------------------------------------------------
    if batch_block is None:
        target_rows = 512                         # keeps the step MXU-bound
        bt = max(1, min(B, max(1, target_rows // max(S, 1))))
        if B >= 2:
            bt = min(bt, max(1, B // 2))          # >=2 blocks: both v7x TCs work
        while B % bt:
            bt -= 1
        budget = 40 << 20                         # conservative for v7x (64 MiB)
        while bt > 1 and _act_vmem_bytes(bt, S, E, H, nhead) > budget:
            bt -= 1
            while B % bt:
                bt -= 1
    else:
        bt = batch_block
        assert B % bt == 0, "batch_block must divide batch"

    x = tokens.astype(jnp.float32)                                    # (B, S, E)
    mask3 = jnp.where(token_mask, jnp.float32(-1e30),
                      jnp.float32(0.0)).reshape(B, 1, S)              # (B, 1, S)
    stacked = _prepare_stacked_params(layer_params, nhead=nhead)

    # ---- resident-vs-streamed weights -----------------------------------------
    wbytes = _weight_bytes(stacked)
    act_bytes = _act_vmem_bytes(bt, S, E, H, nhead)
    if weights_resident is None:
        weights_resident = (2 * wbytes + act_bytes) <= (48 << 20)

    weight_vmem = 2 * (wbytes if weights_resident else max(1, wbytes // L))
    vmem_limit = int(min(96 << 20, max(32 << 20, int(1.25 * (weight_vmem + act_bytes)))))

    # ---- specs -----------------------------------------------------------------
    def batch_spec(full_shape, block0):
        nd = len(full_shape)
        blk = (block0,) + tuple(full_shape[1:])
        return pl.BlockSpec(blk, lambda b, l, _nd=nd: (b,) + (0,) * (_nd - 1))

    def weight_spec(full_shape):
        nd = len(full_shape)
        if weights_resident:
            return pl.BlockSpec(tuple(full_shape),
                                lambda b, l, _nd=nd: (0,) * _nd)
        blk = (1,) + tuple(full_shape[1:])
        return pl.BlockSpec(blk, lambda b, l, _nd=nd: (l,) + (0,) * (_nd - 1))

    in_specs = ([batch_spec((B, S, E), bt), batch_spec((B, 1, S), bt)]
                + [weight_spec(w.shape) for w in stacked])

    # ---- cost estimate (advisory) ----------------------------------------------
    flops = L * B * (S * (8 * E * E + 4 * E * H) + 4 * nhead * S * S * D)
    transcendentals = L * B * nhead * S * S
    stream_mult = 1 if weights_resident else (B // bt)
    bytes_accessed = (wbytes * stream_mult + B * S * E * 4 * 2 + B * S * 4)
    cost = pl.CostEstimate(flops=int(flops),
                           transcendentals=int(transcendentals),
                           bytes_accessed=int(bytes_accessed))

    kern = functools.partial(fused_encoder_kernel, nhead=nhead, eps=eps,
                             weights_resident=weights_resident)

    out = pl.pallas_call(
        kern,
        grid=(B // bt, L),
        in_specs=in_specs,
        out_specs=batch_spec((B, S, E), bt),
        out_shape=jax.ShapeDtypeStruct((B, S, E), out_dtype),
        scratch_shapes=[pltpu.VMEM((bt * S, E), jnp.float32)],
        compiler_params=pltpu.CompilerParams(
            dimension_semantics=("parallel", "arbitrary"),
            vmem_limit_bytes=vmem_limit),
        cost_estimate=cost,
    )(x, mask3, *stacked)
    return out


# ----------------------------------------------------------------------------
# Pure-JAX reference (identical math, no Pallas).
# ----------------------------------------------------------------------------
def transformer_aggregator_ref(tokens, token_mask, layer_params, *, nhead, eps=1e-5):
    B, S, E = tokens.shape
    mask3 = jnp.where(token_mask, jnp.float32(-1e30),
                      jnp.float32(0.0)).reshape(B, 1, S)
    stacked = _prepare_stacked_params(layer_params, nhead=nhead)
    x2 = tokens.reshape(B * S, E).astype(jnp.float32)
    for l in range(len(layer_params)):
        params = tuple(w[l] for w in stacked)
        x2 = _encoder_layer_math(x2, mask3, params,
                                 batch=B, seq=S, nhead=nhead, eps=eps,
                                 in_kernel=False)
    return x2.reshape(B, S, E)


# ----------------------------------------------------------------------------
# Deterministic parameter construction (shapes follow nn.TransformerEncoderLayer).
# ----------------------------------------------------------------------------
def init_layer_params(key, d_model, nhead, hidden):
    ks = jax.random.split(key, 8)
    s = 0.05
    wqkv = jax.random.normal(ks[0], (3 * d_model, d_model), jnp.float32) * s
    bqkv = jax.random.normal(ks[1], (1, 3 * d_model), jnp.float32) * s
    wo = jax.random.normal(ks[2], (d_model, d_model), jnp.float32) * s
    bo = jax.random.normal(ks[3], (1, d_model), jnp.float32) * s
    ln1w = jnp.ones((1, d_model), jnp.float32)
    ln1b = jnp.zeros((1, d_model), jnp.float32)
    w1 = jax.random.normal(ks[4], (hidden, d_model), jnp.float32) * s
    b1 = jax.random.normal(ks[5], (1, hidden), jnp.float32) * s
    w2 = jax.random.normal(ks[6], (d_model, hidden), jnp.float32) * s
    b2 = jax.random.normal(ks[7], (1, d_model), jnp.float32) * s
    ln2w = jnp.ones((1, d_model), jnp.float32)
    ln2b = jnp.zeros((1, d_model), jnp.float32)
    return (wqkv, bqkv, wo, bo, ln1w, ln1b, w1, b1, w2, b2, ln2w, ln2b)


if __name__ == "__main__":
    # Small, TransformerAggregator-consistent shapes.
    B, S, E = 2, 8, 32            # batch, sequence, output_dim (d_model)
    NHEAD = 4                     # config.num_attention_heads
    HIDDEN = 64                   # config.hidden_dim (dim_feedforward)
    NUM_LAYERS = 2                # config.num_transformer_layers

    root = jax.random.PRNGKey(0)
    k_tok, k_par = jax.random.split(root)

    tokens = jax.random.normal(k_tok, (B, S, E), jnp.float32)
    # token_mask: True == padded position (ignored as attention key).
    seq_lens = jnp.array([S, 5], jnp.int32)
    token_mask = jnp.arange(S)[None, :] >= seq_lens[:, None]           # (B, S) bool

    layer_keys = jax.random.split(k_par, NUM_LAYERS)
    layer_params = [init_layer_params(k, E, NHEAD, HIDDEN) for k in layer_keys]

    ref = jax.block_until_ready(
        transformer_aggregator_ref(tokens, token_mask, layer_params, nhead=NHEAD))

    # batch_block=1 exercises both grid axes (2 batch blocks x 2 layers) and the
    # per-batch-block activation-carry reset.  Run both weight paths:
    #   1) VMEM-resident weights (auto-selected at these sizes),
    #   2) per-layer streamed weights (coverage for the large-model path).
    out_resident = jax.block_until_ready(
        transformer_aggregator_pallas(tokens, token_mask, layer_params,
                                      nhead=NHEAD, batch_block=1))
    out_streamed = jax.block_until_ready(
        transformer_aggregator_pallas(tokens, token_mask, layer_params,
                                      nhead=NHEAD, batch_block=1,
                                      weights_resident=False))

    for out in (out_resident, out_streamed):
        assert out.shape == (B, S, E) and out.dtype == jnp.float32
        assert bool(jnp.all(jnp.isfinite(out)))
        assert bool(jnp.allclose(out, ref, atol=2e-2, rtol=2e-2)), "mismatch vs reference"

    print("KERNEL_OK")
</pallas_src>

<mosaic_0001>
module attributes {stable_mosaic.version = 11 : i64} {
  func.func @fused_encoder_kernel(%arg0: i32, %arg1: i32, %arg2: memref<1x8x32xf32, #tpu.memory_space<vmem>>, %arg3: memref<1x1x8xf32, #tpu.memory_space<vmem>>, %arg4: memref<2x32x96xbf16, #tpu.memory_space<vmem>>, %arg5: memref<2x1x96xf32, #tpu.memory_space<vmem>>, %arg6: memref<2x32x32xbf16, #tpu.memory_space<vmem>>, %arg7: memref<2x1x32xf32, #tpu.memory_space<vmem>>, %arg8: memref<2x1x32xf32, #tpu.memory_space<vmem>>, %arg9: memref<2x1x32xf32, #tpu.memory_space<vmem>>, %arg10: memref<2x32x64xbf16, #tpu.memory_space<vmem>>, %arg11: memref<2x1x64xf32, #tpu.memory_space<vmem>>, %arg12: memref<2x64x32xbf16, #tpu.memory_space<vmem>>, %arg13: memref<2x1x32xf32, #tpu.memory_space<vmem>>, %arg14: memref<2x1x32xf32, #tpu.memory_space<vmem>>, %arg15: memref<2x1x32xf32, #tpu.memory_space<vmem>>, %arg16: memref<1x8x32xf32, #tpu.memory_space<vmem>>, %arg17: memref<8x32xf32, #tpu.memory_space<vmem>>) attributes {dimension_semantics = [#tpu.dimension_semantics<parallel>, #tpu.dimension_semantics<arbitrary>], iteration_bounds = array<i64: 2, 2>, scalar_prefetch = 0 : i64, scratch_operands = 1 : i64, tpu.core_type = #tpu.core_type<tc>, window_params = [{transform_indices = @transform_0, window_bounds = array<i64: 1, 8, 32>}, {transform_indices = @transform_1, window_bounds = array<i64: 1, 1, 8>}, {pipeline_mode = #tpu.pipeline_mode<synchronous>, transform_indices = @transform_2, window_bounds = array<i64: 2, 32, 96>}, {pipeline_mode = #tpu.pipeline_mode<synchronous>, transform_indices = @transform_3, window_bounds = array<i64: 2, 1, 96>}, {pipeline_mode = #tpu.pipeline_mode<synchronous>, transform_indices = @transform_4, window_bounds = array<i64: 2, 32, 32>}, {pipeline_mode = #tpu.pipeline_mode<synchronous>, transform_indices = @transform_5, window_bounds = array<i64: 2, 1, 32>}, {pipeline_mode = #tpu.pipeline_mode<synchronous>, transform_indices = @transform_6, window_bounds = array<i64: 2, 1, 32>}, {pipeline_mode = #tpu.pipeline_mode<synchronous>, transform_indices = @transform_7, window_bounds = array<i64: 2, 1, 32>}, {pipeline_mode = #tpu.pipeline_mode<synchronous>, transform_indices = @transform_8, window_bounds = array<i64: 2, 32, 64>}, {pipeline_mode = #tpu.pipeline_mode<synchronous>, transform_indices = @transform_9, window_bounds = array<i64: 2, 1, 64>}, {pipeline_mode = #tpu.pipeline_mode<synchronous>, transform_indices = @transform_10, window_bounds = array<i64: 2, 64, 32>}, {pipeline_mode = #tpu.pipeline_mode<synchronous>, transform_indices = @transform_11, window_bounds = array<i64: 2, 1, 32>}, {pipeline_mode = #tpu.pipeline_mode<synchronous>, transform_indices = @transform_12, window_bounds = array<i64: 2, 1, 32>}, {pipeline_mode = #tpu.pipeline_mode<synchronous>, transform_indices = @transform_13, window_bounds = array<i64: 2, 1, 32>}, {transform_indices = @transform_14, window_bounds = array<i64: 1, 8, 32>}]} {
    %c0_i32 = arith.constant 0 : i32
    %0 = arith.cmpi eq, %arg1, %c0_i32 : i32
    %1 = arith.extui %0 : i1 to i32
    %c0_i32_0 = arith.constant 0 : i32
    %2 = arith.cmpi ne, %1, %c0_i32_0 : i32
    scf.if %2 {
      %c0_50 = arith.constant 0 : index
      %c0_51 = arith.constant 0 : index
      %c0_52 = arith.constant 0 : index
      %172 = vector.load %arg2[%c0_50, %c0_51, %c0_52] : memref<1x8x32xf32, #tpu.memory_space<vmem>>, vector<1x8x32xf32>
      %173 = vector.shape_cast %172 : vector<1x8x32xf32> to vector<8x32xf32>
      %c0_53 = arith.constant 0 : index
      %c0_54 = arith.constant 0 : index
      %174 = vector.load %arg17[%c0_53, %c0_54] : memref<8x32xf32, #tpu.memory_space<vmem>>, vector<8x32xf32>
      tpu.vector_store %arg17[%c0_53, %c0_54], %173 {strides = array<i32>} : memref<8x32xf32, #tpu.memory_space<vmem>>, vector<8x32xf32>,
    } else {
    }
    %3 = arith.index_cast %arg1 : i32 to index
    %c0 = arith.constant 0 : index
    %c0_1 = arith.constant 0 : index
    %4 = vector.load %arg4[%3, %c0, %c0_1] : memref<2x32x96xbf16, #tpu.memory_space<vmem>>, vector<1x32x96xbf16>
    %5 = vector.shape_cast %4 : vector<1x32x96xbf16> to vector<32x96xbf16>
    %6 = arith.index_cast %arg1 : i32 to index
    %c0_2 = arith.constant 0 : index
    %c0_3 = arith.constant 0 : index
    %7 = vector.load %arg5[%6, %c0_2, %c0_3] : memref<2x1x96xf32, #tpu.memory_space<vmem>>, vector<1x1x96xf32>
    %8 = vector.shape_cast %7 : vector<1x1x96xf32> to vector<1x96xf32>
    %9 = arith.index_cast %arg1 : i32 to index
    %c0_4 = arith.constant 0 : index
    %c0_5 = arith.constant 0 : index
    %10 = vector.load %arg6[%9, %c0_4, %c0_5] : memref<2x32x32xbf16, #tpu.memory_space<vmem>>, vector<1x32x32xbf16>
    %11 = vector.shape_cast %10 : vector<1x32x32xbf16> to vector<32x32xbf16>
    %12 = arith.index_cast %arg1 : i32 to index
    %c0_6 = arith.constant 0 : index
    %c0_7 = arith.constant 0 : index
    %13 = vector.load %arg7[%12, %c0_6, %c0_7] : memref<2x1x32xf32, #tpu.memory_space<vmem>>, vector<1x1x32xf32>
    %14 = vector.shape_cast %13 : vector<1x1x32xf32> to vector<1x32xf32>
    %15 = arith.index_cast %arg1 : i32 to index
    %c0_8 = arith.constant 0 : index
    %c0_9 = arith.constant 0 : index
    %16 = vector.load %arg8[%15, %c0_8, %c0_9] : memref<2x1x32xf32, #tpu.memory_space<vmem>>, vector<1x1x32xf32>
    %17 = vector.shape_cast %16 : vector<1x1x32xf32> to vector<1x32xf32>
    %18 = arith.index_cast %arg1 : i32 to index
    %c0_10 = arith.constant 0 : index
    %c0_11 = arith.constant 0 : index
    %19 = vector.load %arg9[%18, %c0_10, %c0_11] : memref<2x1x32xf32, #tpu.memory_space<vmem>>, vector<1x1x32xf32>
    %20 = vector.shape_cast %19 : vector<1x1x32xf32> to vector<1x32xf32>
    %21 = arith.index_cast %arg1 : i32 to index
    %c0_12 = arith.constant 0 : index
    %c0_13 = arith.constant 0 : index
    %22 = vector.load %arg10[%21, %c0_12, %c0_13] : memref<2x32x64xbf16, #tpu.memory_space<vmem>>, vector<1x32x64xbf16>
    %23 = vector.shape_cast %22 : vector<1x32x64xbf16> to vector<32x64xbf16>
    %24 = arith.index_cast %arg1 : i32 to index
    %c0_14 = arith.constant 0 : index
    %c0_15 = arith.constant 0 : index
    %25 = vector.load %arg11[%24, %c0_14, %c0_15] : memref<2x1x64xf32, #tpu.memory_space<vmem>>, vector<1x1x64xf32>
    %26 = vector.shape_cast %25 : vector<1x1x64xf32> to vector<1x64xf32>
    %27 = arith.index_cast %arg1 : i32 to index
    %c0_16 = arith.constant 0 : index
    %c0_17 = arith.constant 0 : index
    %28 = vector.load %arg12[%27, %c0_16, %c0_17] : memref<2x64x32xbf16, #tpu.memory_space<vmem>>, vector<1x64x32xbf16>
    %29 = vector.shape_cast %28 : vector<1x64x32xbf16> to vector<64x32xbf16>
    %30 = arith.index_cast %arg1 : i32 to index
    %c0_18 = arith.constant 0 : index
    %c0_19 = arith.constant 0 : index
    %31 = vector.load %arg13[%30, %c0_18, %c0_19] : memref<2x1x32xf32, #tpu.memory_space<vmem>>, vector<1x1x32xf32>
    %32 = vector.shape_cast %31 : vector<1x1x32xf32> to vector<1x32xf32>
    %33 = arith.index_cast %arg1 : i32 to index
    %c0_20 = arith.constant 0 : index
    %c0_21 = arith.constant 0 : index
    %34 = vector.load %arg14[%33, %c0_20, %c0_21] : memref<2x1x32xf32, #tpu.memory_space<vmem>>, vector<1x1x32xf32>
    %35 = vector.shape_cast %34 : vector<1x1x32xf32> to vector<1x32xf32>
    %36 = arith.index_cast %arg1 : i32 to index
    %c0_22 = arith.constant 0 : index
    %c0_23 = arith.constant 0 : index
    %37 = vector.load %arg15[%36, %c0_22, %c0_23] : memref<2x1x32xf32, #tpu.memory_space<vmem>>, vector<1x1x32xf32>
    %38 = vector.shape_cast %37 : vector<1x1x32xf32> to vector<1x32xf32>
    %c0_24 = arith.constant 0 : index
    %c0_25 = arith.constant 0 : index
    %39 = vector.load %arg17[%c0_24, %c0_25] : memref<8x32xf32, #tpu.memory_space<vmem>>, vector<8x32xf32>
    %c0_26 = arith.constant 0 : index
    %c0_27 = arith.constant 0 : index
    %c0_28 = arith.constant 0 : index
    %40 = vector.load %arg3[%c0_26, %c0_27, %c0_28] : memref<1x1x8xf32, #tpu.memory_space<vmem>>, vector<1x1x8xf32>
    %41 = arith.truncf %39 : vector<8x32xf32> to vector<8x32xbf16>
    %cst = arith.constant dense<0.000000e+00> : vector<8x96xf32>
    %42 = tpu.matmul %41, %5, %cst {dimension_numbers = #tpu.dot_dimension_numbers<[1], [0], [0], [1], [0, 0, 1, 1], [], []>} : vector<8x32xbf16>, vector<32x96xbf16>, vector<8x96xf32> -> vector<8x96xf32>
    %43 = vector.broadcast %8 : vector<1x96xf32> to vector<8x96xf32>
    %44 = arith.addf %42, %43 : vector<8x96xf32>
    %45 = vector.extract_strided_slice %44 {offsets = [0, 0], sizes = [8, 8], strides = [1, 1]} : vector<8x96xf32> to vector<8x8xf32>
    %46 = vector.shape_cast %45 : vector<8x8xf32> to vector<1x8x8xf32>
    %47 = vector.extract_strided_slice %44 {offsets = [0, 8], sizes = [8, 8], strides = [1, 1]} : vector<8x96xf32> to vector<8x8xf32>
    %48 = vector.shape_cast %47 : vector<8x8xf32> to vector<1x8x8xf32>
    %49 = vector.extract_strided_slice %44 {offsets = [0, 16], sizes = [8, 8], strides = [1, 1]} : vector<8x96xf32> to vector<8x8xf32>
    %50 = vector.shape_cast %49 : vector<8x8xf32> to vector<1x8x8xf32>
    %51 = vector.extract_strided_slice %44 {offsets = [0, 24], sizes = [8, 8], strides = [1, 1]} : vector<8x96xf32> to vector<8x8xf32>
    %52 = vector.shape_cast %51 : vector<8x8xf32> to vector<1x8x8xf32>
    %53 = tpu.concatenate %46, %48, %50, %52 in 1 : vector<1x8x8xf32>, vector<1x8x8xf32>, vector<1x8x8xf32>, vector<1x8x8xf32> -> vector<1x32x8xf32>
    %54 = vector.shape_cast %53 : vector<1x32x8xf32> to vector<4x8x8xf32>
    %55 = arith.truncf %54 : vector<4x8x8xf32> to vector<4x8x8xbf16>
    %56 = vector.extract_strided_slice %44 {offsets = [0, 32], sizes = [8, 8], strides = [1, 1]} : vector<8x96xf32> to vector<8x8xf32>
    %57 = vector.shape_cast %56 : vector<8x8xf32> to vector<1x8x8xf32>
    %58 = vector.extract_strided_slice %44 {offsets = [0, 40], sizes = [8, 8], strides = [1, 1]} : vector<8x96xf32> to vector<8x8xf32>
    %59 = vector.shape_cast %58 : vector<8x8xf32> to vector<1x8x8xf32>
    %60 = vector.extract_strided_slice %44 {offsets = [0, 48], sizes = [8, 8], strides = [1, 1]} : vector<8x96xf32> to vector<8x8xf32>
    %61 = vector.shape_cast %60 : vector<8x8xf32> to vector<1x8x8xf32>
    %62 = vector.extract_strided_slice %44 {offsets = [0, 56], sizes = [8, 8], strides = [1, 1]} : vector<8x96xf32> to vector<8x8xf32>
    %63 = vector.shape_cast %62 : vector<8x8xf32> to vector<1x8x8xf32>
    %64 = tpu.concatenate %57, %59, %61, %63 in 1 : vector<1x8x8xf32>, vector<1x8x8xf32>, vector<1x8x8xf32>, vector<1x8x8xf32> -> vector<1x32x8xf32>
    %65 = vector.shape_cast %64 : vector<1x32x8xf32> to vector<4x8x8xf32>
    %66 = arith.truncf %65 : vector<4x8x8xf32> to vector<4x8x8xbf16>
    %67 = vector.extract_strided_slice %44 {offsets = [0, 64], sizes = [8, 8], strides = [1, 1]} : vector<8x96xf32> to vector<8x8xf32>
    %68 = vector.shape_cast %67 : vector<8x8xf32> to vector<1x8x8xf32>
    %69 = vector.extract_strided_slice %44 {offsets = [0, 72], sizes = [8, 8], strides = [1, 1]} : vector<8x96xf32> to vector<8x8xf32>
    %70 = vector.shape_cast %69 : vector<8x8xf32> to vector<1x8x8xf32>
    %71 = vector.extract_strided_slice %44 {offsets = [0, 80], sizes = [8, 8], strides = [1, 1]} : vector<8x96xf32> to vector<8x8xf32>
    %72 = vector.shape_cast %71 : vector<8x8xf32> to vector<1x8x8xf32>
    %73 = vector.extract_strided_slice %44 {offsets = [0, 88], sizes = [8, 8], strides = [1, 1]} : vector<8x96xf32> to vector<8x8xf32>
    %74 = vector.shape_cast %73 : vector<8x8xf32> to vector<1x8x8xf32>
    %75 = tpu.concatenate %68, %70, %72, %74 in 1 : vector<1x8x8xf32>, vector<1x8x8xf32>, vector<1x8x8xf32>, vector<1x8x8xf32> -> vector<1x32x8xf32>
    %76 = vector.shape_cast %75 : vector<1x32x8xf32> to vector<4x8x8xf32>
    %77 = arith.truncf %76 : vector<4x8x8xf32> to vector<4x8x8xbf16>
    "tpu.trace_start"() <{level = 10 : i32, message = "bqd,bkd->bqk"}> : () -> ()
    %cst_29 = arith.constant dense<0.000000e+00> : vector<4x8x8xf32>
    %78 = tpu.matmul %55, %66, %cst_29 {dimension_numbers = #tpu.dot_dimension_numbers<[2], [2], [1], [1], [0, 0, 0, 1, 1, 1], [0], [0]>} : vector<4x8x8xbf16>, vector<4x8x8xbf16>, vector<4x8x8xf32> -> vector<4x8x8xf32>
    "tpu.trace_stop"() : () -> ()
    %79 = vector.shape_cast %78 : vector<4x8x8xf32> to vector<1x32x8xf32>
    %80 = vector.broadcast %40 : vector<1x1x8xf32> to vector<1x32x8xf32>
    %81 = arith.addf %79, %80 : vector<1x32x8xf32>
    %cst_30 = arith.constant dense<0xFF800000> : vector<1x32xf32>
    %82 = vector.multi_reduction <maximumf>, %81, %cst_30 [2] : vector<1x32x8xf32> to vector<1x32xf32>
    %83 = vector.shape_cast %82 : vector<1x32xf32> to vector<1x32x1xf32>
    %84 = vector.broadcast %83 : vector<1x32x1xf32> to vector<1x32x8xf32>
    %85 = arith.subf %81, %84 : vector<1x32x8xf32>
    %86 = math.exp %85 : vector<1x32x8xf32>
    %cst_31 = arith.constant dense<0.000000e+00> : vector<1x32xf32>
    %87 = vector.multi_reduction <add>, %86, %cst_31 [2] : vector<1x32x8xf32> to vector<1x32xf32>
    %88 = vector.shape_cast %87 : vector<1x32xf32> to vector<1x32x1xf32>
    %89 = vector.shape_cast %86 : vector<1x32x8xf32> to vector<4x8x8xf32>
    %90 = arith.truncf %89 : vector<4x8x8xf32> to vector<4x8x8xbf16>
    "tpu.trace_start"() <{level = 10 : i32, message = "bqk,bkd->bqd"}> : () -> ()
    %cst_32 = arith.constant dense<0.000000e+00> : vector<4x8x8xf32>
    %91 = tpu.matmul %90, %77, %cst_32 {dimension_numbers = #tpu.dot_dimension_numbers<[2], [1], [1], [2], [0, 0, 0, 1, 1, 2], [0], [0]>} : vector<4x8x8xbf16>, vector<4x8x8xbf16>, vector<4x8x8xf32> -> vector<4x8x8xf32>
    "tpu.trace_stop"() : () -> ()
    %92 = tpu.reciprocal %88 {approx = true} : vector<1x32x1xf32> -> vector<1x32x1xf32>
    %93 = vector.shape_cast %92 : vector<1x32x1xf32> to vector<4x8x1xf32>
    %94 = vector.broadcast %93 : vector<4x8x1xf32> to vector<4x8x8xf32>
    %95 = arith.mulf %91, %94 : vector<4x8x8xf32>
    %96 = vector.shape_cast %95 : vector<4x8x8xf32> to vector<1x32x8xf32>
    %97 = vector.extract_strided_slice %96 {offsets = [0, 0, 0], sizes = [1, 8, 8], strides = [1, 1, 1]} : vector<1x32x8xf32> to vector<1x8x8xf32>
    %98 = vector.shape_cast %97 : vector<1x8x8xf32> to vector<8x8xf32>
    %99 = vector.extract_strided_slice %96 {offsets = [0, 8, 0], sizes = [1, 8, 8], strides = [1, 1, 1]} : vector<1x32x8xf32> to vector<1x8x8xf32>
    %100 = vector.shape_cast %99 : vector<1x8x8xf32> to vector<8x8xf32>
    %101 = vector.extract_strided_slice %96 {offsets = [0, 16, 0], sizes = [1, 8, 8], strides = [1, 1, 1]} : vector<1x32x8xf32> to vector<1x8x8xf32>
    %102 = vector.shape_cast %101 : vector<1x8x8xf32> to vector<8x8xf32>
    %103 = vector.extract_strided_slice %96 {offsets = [0, 24, 0], sizes = [1, 8, 8], strides = [1, 1, 1]} : vector<1x32x8xf32> to vector<1x8x8xf32>
    %104 = vector.shape_cast %103 : vector<1x8x8xf32> to vector<8x8xf32>
    %105 = tpu.concatenate %98, %100, %102, %104 in 1 : vector<8x8xf32>, vector<8x8xf32>, vector<8x8xf32>, vector<8x8xf32> -> vector<8x32xf32>
    %106 = arith.truncf %105 : vector<8x32xf32> to vector<8x32xbf16>
    %cst_33 = arith.constant dense<0.000000e+00> : vector<8x32xf32>
    %107 = tpu.matmul %106, %11, %cst_33 {dimension_numbers = #tpu.dot_dimension_numbers<[1], [0], [0], [1], [0, 0, 1, 1], [], []>} : vector<8x32xbf16>, vector<32x32xbf16>, vector<8x32xf32> -> vector<8x32xf32>
    %108 = vector.broadcast %14 : vector<1x32xf32> to vector<8x32xf32>
    %109 = arith.addf %107, %108 : vector<8x32xf32>
    %110 = arith.addf %39, %109 : vector<8x32xf32>
    %cst_34 = arith.constant dense<0.000000e+00> : vector<8xf32>
    %111 = vector.multi_reduction <add>, %110, %cst_34 [1] : vector<8x32xf32> to vector<8xf32>
    %112 = vector.shape_cast %111 : vector<8xf32> to vector<8x1xf32>
    %cst_35 = arith.constant 3.200000e+01 : f32
    %113 = vector.broadcast %cst_35 : f32 to vector<8x1xf32>
    %114 = arith.divf %112, %113 : vector<8x1xf32>
    %115 = vector.broadcast %114 : vector<8x1xf32> to vector<8x32xf32>
    %116 = arith.subf %110, %115 : vector<8x32xf32>
    %117 = arith.mulf %116, %116 : vector<8x32xf32>
    %cst_36 = arith.constant dense<0.000000e+00> : vector<8xf32>
    %118 = vector.multi_reduction <add>, %117, %cst_36 [1] : vector<8x32xf32> to vector<8xf32>
    %119 = vector.shape_cast %118 : vector<8xf32> to vector<8x1xf32>
    %cst_37 = arith.constant 3.200000e+01 : f32
    %120 = vector.broadcast %cst_37 : f32 to vector<8x1xf32>
    %121 = arith.divf %119, %120 : vector<8x1xf32>
    %122 = vector.broadcast %114 : vector<8x1xf32> to vector<8x32xf32>
    %123 = arith.subf %110, %122 : vector<8x32xf32>
    %cst_38 = arith.constant 9.99999974E-6 : f32
    %124 = vector.broadcast %cst_38 : f32 to vector<8x1xf32>
    %125 = arith.addf %121, %124 : vector<8x1xf32>
    %126 = math.rsqrt %125 : vector<8x1xf32>
    %127 = vector.broadcast %126 : vector<8x1xf32> to vector<8x32xf32>
    %128 = arith.mulf %123, %127 : vector<8x32xf32>
    %129 = vector.broadcast %17 : vector<1x32xf32> to vector<8x32xf32>
    %130 = arith.mulf %128, %129 : vector<8x32xf32>
    %131 = vector.broadcast %20 : vector<1x32xf32> to vector<8x32xf32>
    %132 = arith.addf %130, %131 : vector<8x32xf32>
    %133 = arith.truncf %132 : vector<8x32xf32> to vector<8x32xbf16>
    %cst_39 = arith.constant dense<0.000000e+00> : vector<8x64xf32>
    %134 = tpu.matmul %133, %23, %cst_39 {dimension_numbers = #tpu.dot_dimension_numbers<[1], [0], [0], [1], [0, 0, 1, 1], [], []>} : vector<8x32xbf16>, vector<32x64xbf16>, vector<8x64xf32> -> vector<8x64xf32>
    %135 = vector.broadcast %26 : vector<1x64xf32> to vector<8x64xf32>
    %136 = arith.addf %134, %135 : vector<8x64xf32>
    %cst_40 = arith.constant 0.000000e+00 : f32
    %137 = vector.broadcast %cst_40 : f32 to vector<8x64xf32>
    %138 = arith.maximumf %136, %137 : vector<8x64xf32>
    %139 = arith.truncf %138 : vector<8x64xf32> to vector<8x64xbf16>
    %cst_41 = arith.constant dense<0.000000e+00> : vector<8x32xf32>
    %140 = tpu.matmul %139, %29, %cst_41 {dimension_numbers = #tpu.dot_dimension_numbers<[1], [0], [0], [1], [0, 0, 1, 1], [], []>} : vector<8x64xbf16>, vector<64x32xbf16>, vector<8x32xf32> -> vector<8x32xf32>
    %141 = vector.broadcast %32 : vector<1x32xf32> to vector<8x32xf32>
    %142 = arith.addf %140, %141 : vector<8x32xf32>
    %143 = arith.addf %132, %142 : vector<8x32xf32>
    %cst_42 = arith.constant dense<0.000000e+00> : vector<8xf32>
    %144 = vector.multi_reduction <add>, %143, %cst_42 [1] : vector<8x32xf32> to vector<8xf32>
    %145 = vector.shape_cast %144 : vector<8xf32> to vector<8x1xf32>
    %cst_43 = arith.constant 3.200000e+01 : f32
    %146 = vector.broadcast %cst_43 : f32 to vector<8x1xf32>
    %147 = arith.divf %145, %146 : vector<8x1xf32>
    %148 = vector.broadcast %147 : vector<8x1xf32> to vector<8x32xf32>
    %149 = arith.subf %143, %148 : vector<8x32xf32>
    %150 = arith.mulf %149, %149 : vector<8x32xf32>
    %cst_44 = arith.constant dense<0.000000e+00> : vector<8xf32>
    %151 = vector.multi_reduction <add>, %150, %cst_44 [1] : vector<8x32xf32> to vector<8xf32>
    %152 = vector.shape_cast %151 : vector<8xf32> to vector<8x1xf32>
    %cst_45 = arith.constant 3.200000e+01 : f32
    %153 = vector.broadcast %cst_45 : f32 to vector<8x1xf32>
    %154 = arith.divf %152, %153 : vector<8x1xf32>
    %155 = vector.broadcast %147 : vector<8x1xf32> to vector<8x32xf32>
    %156 = arith.subf %143, %155 : vector<8x32xf32>
    %cst_46 = arith.constant 9.99999974E-6 : f32
    %157 = vector.broadcast %cst_46 : f32 to vector<8x1xf32>
    %158 = arith.addf %154, %157 : vector<8x1xf32>
    %159 = math.rsqrt %158 : vector<8x1xf32>
    %160 = vector.broadcast %159 : vector<8x1xf32> to vector<8x32xf32>
    %161 = arith.mulf %156, %160 : vector<8x32xf32>
    %162 = vector.broadcast %35 : vector<1x32xf32> to vector<8x32xf32>
    %163 = arith.mulf %161, %162 : vector<8x32xf32>
    %164 = vector.broadcast %38 : vector<1x32xf32> to vector<8x32xf32>
    %165 = arith.addf %163, %164 : vector<8x32xf32>
    %c1_i32 = arith.constant 1 : i32
    %166 = arith.cmpi slt, %arg1, %c1_i32 : i32
    %167 = arith.extui %166 : i1 to i32
    %c0_i32_47 = arith.constant 0 : i32
    %168 = arith.cmpi ne, %167, %c0_i32_47 : i32
    scf.if %168 {
      %c0_50 = arith.constant 0 : index
      %c0_51 = arith.constant 0 : index
      %172 = vector.load %arg17[%c0_50, %c0_51] : memref<8x32xf32, #tpu.memory_space<vmem>>, vector<8x32xf32>
      tpu.vector_store %arg17[%c0_50, %c0_51], %165 {strides = array<i32>} : memref<8x32xf32, #tpu.memory_space<vmem>>, vector<8x32xf32>,
    } else {
    }
    %c1_i32_48 = arith.constant 1 : i32
    %169 = arith.cmpi eq, %arg1, %c1_i32_48 : i32
    %170 = arith.extui %169 : i1 to i32
    %c0_i32_49 = arith.constant 0 : i32
    %171 = arith.cmpi ne, %170, %c0_i32_49 : i32
    scf.if %171 {
      %172 = vector.shape_cast %165 : vector<8x32xf32> to vector<1x8x32xf32>
      %c0_50 = arith.constant 0 : index
      %c0_51 = arith.constant 0 : index
      %c0_52 = arith.constant 0 : index
      %173 = vector.load %arg16[%c0_50, %c0_51, %c0_52] : memref<1x8x32xf32, #tpu.memory_space<vmem>>, vector<1x8x32xf32>
      tpu.vector_store %arg16[%c0_50, %c0_51, %c0_52], %172 {strides = array<i32>} : memref<1x8x32xf32, #tpu.memory_space<vmem>>, vector<1x8x32xf32>,
    } else {
    }
    return
  }
  func.func @transform_0(%arg0: i32, %arg1: i32) -> (i32, i32, i32) {
    %c0_i32 = arith.constant 0 : i32
    %c0_i32_0 = arith.constant 0 : i32
    %c0_i32_1 = arith.constant 0 : i32
    return %arg0, %c0_i32, %c0_i32_0 : i32, i32, i32
  }
  func.func @transform_1(%arg0: i32, %arg1: i32) -> (i32, i32, i32) {
    %c0_i32 = arith.constant 0 : i32
    %c0_i32_0 = arith.constant 0 : i32
    %c0_i32_1 = arith.constant 0 : i32
    return %arg0, %c0_i32, %c0_i32_0 : i32, i32, i32
  }
  func.func @transform_2(%arg0: i32, %arg1: i32) -> (i32, i32, i32) {
    %c0_i32 = arith.constant 0 : i32
    %c0_i32_0 = arith.constant 0 : i32
    %c0_i32_1 = arith.constant 0 : i32
    %c0_i32_2 = arith.constant 0 : i32
    return %c0_i32, %c0_i32_0, %c0_i32_1 : i32, i32, i32
  }
  func.func @transform_3(%arg0: i32, %arg1: i32) -> (i32, i32, i32) {
    %c0_i32 = arith.constant 0 : i32
    %c0_i32_0 = arith.constant 0 : i32
    %c0_i32_1 = arith.constant 0 : i32
    %c0_i32_2 = arith.constant 0 : i32
    return %c0_i32, %c0_i32_0, %c0_i32_1 : i32, i32, i32
  }
  func.func @transform_4(%arg0: i32, %arg1: i32) -> (i32, i32, i32) {
    %c0_i32 = arith.constant 0 : i32
    %c0_i32_0 = arith.constant 0 : i32
    %c0_i32_1 = arith.constant 0 : i32
    %c0_i32_2 = arith.constant 0 : i32
    return %c0_i32, %c0_i32_0, %c0_i32_1 : i32, i32, i32
  }
  func.func @transform_5(%arg0: i32, %arg1: i32) -> (i32, i32, i32) {
    %c0_i32 = arith.constant 0 : i32
    %c0_i32_0 = arith.constant 0 : i32
    %c0_i32_1 = arith.constant 0 : i32
    %c0_i32_2 = arith.constant 0 : i32
    return %c0_i32, %c0_i32_0, %c0_i32_1 : i32, i32, i32
  }
  func.func @transform_6(%arg0: i32, %arg1: i32) -> (i32, i32, i32) {
    %c0_i32 = arith.constant 0 : i32
    %c0_i32_0 = arith.constant 0 : i32
    %c0_i32_1 = arith.constant 0 : i32
    %c0_i32_2 = arith.constant 0 : i32
    return %c0_i32, %c0_i32_0, %c0_i32_1 : i32, i32, i32
  }
  func.func @transform_7(%arg0: i32, %arg1: i32) -> (i32, i32, i32) {
    %c0_i32 = arith.constant 0 : i32
    %c0_i32_0 = arith.constant 0 : i32
    %c0_i32_1 = arith.constant 0 : i32
    %c0_i32_2 = arith.constant 0 : i32
    return %c0_i32, %c0_i32_0, %c0_i32_1 : i32, i32, i32
  }
  func.func @transform_8(%arg0: i32, %arg1: i32) -> (i32, i32, i32) {
    %c0_i32 = arith.constant 0 : i32
    %c0_i32_0 = arith.constant 0 : i32
    %c0_i32_1 = arith.constant 0 : i32
    %c0_i32_2 = arith.constant 0 : i32
    return %c0_i32, %c0_i32_0, %c0_i32_1 : i32, i32, i32
  }
  func.func @transform_9(%arg0: i32, %arg1: i32) -> (i32, i32, i32) {
    %c0_i32 = arith.constant 0 : i32
    %c0_i32_0 = arith.constant 0 : i32
    %c0_i32_1 = arith.constant 0 : i32
    %c0_i32_2 = arith.constant 0 : i32
    return %c0_i32, %c0_i32_0, %c0_i32_1 : i32, i32, i32
  }
  func.func @transform_10(%arg0: i32, %arg1: i32) -> (i32, i32, i32) {
    %c0_i32 = arith.constant 0 : i32
    %c0_i32_0 = arith.constant 0 : i32
    %c0_i32_1 = arith.constant 0 : i32
    %c0_i32_2 = arith.constant 0 : i32
    return %c0_i32, %c0_i32_0, %c0_i32_1 : i32, i32, i32
  }
  func.func @transform_11(%arg0: i32, %arg1: i32) -> (i32, i32, i32) {
    %c0_i32 = arith.constant 0 : i32
    %c0_i32_0 = arith.constant 0 : i32
    %c0_i32_1 = arith.constant 0 : i32
    %c0_i32_2 = arith.constant 0 : i32
    return %c0_i32, %c0_i32_0, %c0_i32_1 : i32, i32, i32
  }
  func.func @transform_12(%arg0: i32, %arg1: i32) -> (i32, i32, i32) {
    %c0_i32 = arith.constant 0 : i32
    %c0_i32_0 = arith.constant 0 : i32
    %c0_i32_1 = arith.constant 0 : i32
    %c0_i32_2 = arith.constant 0 : i32
    return %c0_i32, %c0_i32_0, %c0_i32_1 : i32, i32, i32
  }
  func.func @transform_13(%arg0: i32, %arg1: i32) -> (i32, i32, i32) {
    %c0_i32 = arith.constant 0 : i32
    %c0_i32_0 = arith.constant 0 : i32
    %c0_i32_1 = arith.constant 0 : i32
    %c0_i32_2 = arith.constant 0 : i32
    return %c0_i32, %c0_i32_0, %c0_i32_1 : i32, i32, i32
  }
  func.func @transform_14(%arg0: i32, %arg1: i32) -> (i32, i32, i32) {
    %c0_i32 = arith.constant 0 : i32
    %c0_i32_0 = arith.constant 0 : i32
    %c0_i32_1 = arith.constant 0 : i32
    return %arg0, %c0_i32, %c0_i32_0 : i32, i32, i32
  }
}

</mosaic_0001>

<bundles_post_ra>
// kernel: tpu_custom_call.1
= control target key start
LH: loop header
LB: loop body
LE: loop exit
PB: predicated region body
PF: predicated region fallthrough
CT: control target
= control target key end

     0   :  { %s2188_s0 = inlined_call_operand.hbm [shape: f32[2,8,32], index: 0, kind: input, shape index: {}]   ;;  %s2189_s1 = inlined_call_operand.hbm [shape: f32[2,1,8], index: 1, kind: input, shape index: {}]   ;;  %s2190_s2 = inlined_call_operand.vmem [shape: bf16[2,32,96], index: 2, kind: input, shape index: {}]   ;;  %s2191_s3 = inlined_call_operand.hbm [shape: f32[2,1,96], index: 3, kind: input, shape index: {}]   ;;  %s2192_s4 = inlined_call_operand.vmem [shape: bf16[2,32,32], index: 4, kind: input, shape index: {}]   ;;  %s2193_s5 = inlined_call_operand.vmem [shape: f32[2,1,32], index: 5, kind: input, shape index: {}]   ;;  %s2194_s6 = inlined_call_operand.vmem [shape: f32[2,1,32], index: 6, kind: input, shape index: {}]   ;;  %s2195_s7 = inlined_call_operand.hbm [shape: f32[2,1,32], index: 7, kind: input, shape index: {}]   ;;  %s2196_s8 = inlined_call_operand.vmem [shape: bf16[2,32,64], index: 8, kind: input, shape index: {}]   ;;  %s2197_s9 = inlined_call_operand.vmem [shape: f32[2,1,64], index: 9, kind: input, shape index: {}]   ;;  %s2198_s10 = inlined_call_operand.vmem [shape: bf16[2,64,32], index: 10, kind: input, shape index: {}]   ;;  %s2199_s11 = inlined_call_operand.vmem [shape: f32[2,1,32], index: 11, kind: input, shape index: {}]   ;;  %s2200_s12 = inlined_call_operand.vmem [shape: f32[2,1,32], index: 12, kind: input, shape index: {}]   ;;  %s2201_s13 = inlined_call_operand.hbm [shape: f32[2,1,32], index: 13, kind: input, shape index: {}]   ;;  %s2202_s14 = inlined_call_operand.hbm [shape: f32[2,8,32], index: 14, kind: output, shape index: {}]  }
   0x1   :  { %2212 = sst [smem:[#allocation27_spill]] %s2191_s3 }
   0x2   :  { %2213 = sst [smem:[#allocation28_spill]] %s2195_s7 }
   0x3   :  { %2214 = sst [smem:[#allocation29_spill]] %s2196_s8 }
   0x4   :  { %2215 = sst [smem:[#allocation30_spill]] %s2197_s9 }
   0x5   :  { %2216 = sst [smem:[#allocation31_spill]] %s2198_s10 }
   0x6   :  { %2217 = sst [smem:[#allocation32_spill]] %s2199_s11 }
   0x7   :  { %2218 = sst [smem:[#allocation33_spill]] %s2200_s12 }
   0x8   :  { %2219 = sst [smem:[#allocation34_spill]] %s2201_s13 }
   0x9   :  { %2220 = sst [smem:[#allocation35_spill]] %s2202_s14 }
   0xa   :  { %19 = vsyncpa [#allocation4], 0 }
   0xb   :  { %21 = vsyncpa [#allocation4 + $0x1], 0 }
   0xc   :  { %22 = vsyncpa [#allocation7], 0 }
   0xd   :  { %24 = vsyncpa [#allocation7 + $0x1], 0 }
   0xe   :  { %25 = vsyncpa [#allocation10], 0 }
   0xf   :  { %26 = vsyncpa [#allocation5], 0 }
  0x10   :  { %28 = vsyncpa [#allocation5 + $0x1], 0  ;;  %s1888_s29 = smov 0   ;;  %s1890_s30 = smov 0  }
  0x11   :  { %s1892_s15 = smov 0   ;;  %s1894_s16 = smov 0  }
  0x12   :  { %s1896_s17 = smov 0   ;;  %s1898_s18 = smov 0  }
  0x13   :  { %s1900_s19 = smov 0   ;;  %s1902_s20 = smov 0  }
  0x14 LB: > { %2221 = sst [smem:[#allocation18_spill]] %s1769_s29  ;;  %s1929_s21 = sadd.s32 4294967295, %s1797_s20   ;;  %s1797_s20 = sphi %s1902_s20, %s34_s20   ;;  %s1793_s19 = sphi %s1900_s19, %s2257_s19   ;;  %s1789_s18 = sphi %s1898_s18, %s2252_s18   ;;  %s1785_s17 = sphi %s1896_s17, %s2256_s17   ;;  %s1781_s16 = sphi %s1894_s16, %s2251_s16   ;;  %s1777_s15 = sphi %s1892_s15, %s2250_s15   ;;  %s1773_s30 = sphi %s1890_s30, %s2255_s30   ;;  %s1769_s29 = sphi %s1888_s29, %s2254_s29  }
  0x15   : > { %2222 = sst [smem:[#allocation19_spill]] %s1777_s15  ;;  %p1289_p0 = scmp.ge.s32.totalorder %s1797_s20, 1 }
  0x16   : > { %2223 = sst [smem:[#allocation20_spill]] %s1785_s17  ;;  %p67_p1 = scmp.eq.s32.totalorder %s1929_s21, 0 }
  0x17   : > { %2224 = sst [smem:[#allocation21_spill]] %s1789_s18  ;;  %p381_p2 = scmp.lt.s32.totalorder %s1797_s20, 5 }
  0x18   : > { %s2225_s3 = sld [smem:[#allocation27_spill]]  ;;  %s1799_s26 = smov [#allocation8]  }
  0x19   : > { %p1937_p3 = pnand %p1289_p0, %p381_p2  ;;  %s397_s27 = sshll.u32 %s1799_s26, 4  ;;  %s398_s27 = int_to_ptr.vmem [resolvable:$true] %s397_s27 }
  0x1a   : > { %s2228_s7 = sld [smem:[#allocation28_spill]]  ;;  %s1800_s23 = smov 16  }
  0x1b   : > { %p1399_p4 = pneg %p1937_p3  ;;  %s1802_s26 = smov [#allocation9]  }
  0x1c   : > { %s420_s12 = sshll.u32 %s1802_s26, 4  ;;  %s2229_s13 = sld [smem:[#allocation34_spill]]  ;;  %s421_s12 = int_to_ptr.vmem [resolvable:$true] %s420_s12 }
  0x1d   : > { %p1945_p5 = pnand %p1399_p4, %p67_p1  ;;  %s46_s26 = sadd.s32 1, %s1793_s19 }
  0x1e   : > { %s395_s24 = sshll.u32 %s2225_s3, 4  ;;  %s1801_s3 = smov 1   ;;  %s396_s24 = int_to_ptr.hbm [resolvable:$true] %s395_s24 }
  0x1f   : > { %1402 = dma.hbm_to_vmem [thread:$0]  (!%p1945_p5), %s396_s24, 32, %s398_s27, [#allocation7], %s1800_s23, %s1800_s23, %s1801_s3  }
  0x20   : > { %s418_s22 = sshll.u32 %s2228_s7, 4  ;;  %s1803_s7 = smov [#allocation11]   ;;  %s419_s22 = int_to_ptr.hbm [resolvable:$true] %s418_s22 }
  0x21   : > { %1405 = dma.hbm_to_vmem [thread:$0]  (!%p1945_p5), %s419_s22, 32, %s421_s12, [#allocation10], %s1800_s23, %s1800_s23, %s1801_s3  }
  0x22   : > { %s447_s17 = sshll.u32 %s2229_s13, 4  ;;  %s449_s10 = sshll.u32 %s1803_s7, 4  ;;  %s448_s17 = int_to_ptr.hbm [resolvable:$true] %s447_s17  ;;  %s450_s10 = int_to_ptr.vmem [resolvable:$true] %s449_s10 }
  0x23   : > { %1408 = dma.hbm_to_vmem [thread:$0]  (!%p1945_p5), %s448_s17, 32, %s450_s10, [#allocation10], %s1800_s23, %s1800_s23, %s1801_s3  }
  0x24   : > { %s1288_s24 = sadd.s32 4294967294, %s1797_s20   ;;  %s43_s27 = sadd.s32 1, %s1789_s18 }
  0x25   : > { %p44_p6 = scmp.ge.s32.totalorder %s43_s27, 2  ;;  %s53_s11 = sadd.s32 1, %s1777_s15 }
  0x26   : > { %p60_p7 = scmp.ne.s32.totalorder %s1777_s15, %s1773_s30  ;;  %p61_p8 = scmp.eq.s32.totalorder %s1797_s20, 0 }
  0x27   : > { %s2259_s27 = smov (%p44_p6, %s43_s27), 0  ;;  %s2261_s26 = smov (!%p44_p6, %s46_s26), %s1793_s19 }
  0x28   : > { %2230 = sst [smem:[#allocation22_spill]] %s2259_s27  ;;  %p1971_p9 = por %p61_p8, %p60_p7 }
  0x29   : > { %p66_p10 = scmp.ne.s32.totalorder %s1773_s30, %s1769_s29  ;;  %p48_p11 = scmp.ge.s32.totalorder %s2261_s26, 2 }
  0x2a   : > { %p368_p12 = scmp.eq.s32.totalorder %s1929_s21, 3  ;;  %p374_p0 = scmp.eq.s32.totalorder %s1288_s24, 3 }
  0x2b   : > { %p1980_p13 = por %p67_p1, %p66_p10  ;;  %s2263_s26 = smov (%p48_p11, %s2261_s26), 0 }
  0x2c   : > { %2233 = sst [smem:[#allocation23_spill]] %s2263_s26  ;;  %p1986_p2 = por %p368_p12, %p60_p7 }
  0x2d   : > { %p1990_p4 = por %p374_p0, %p66_p10  ;;  %s50_s28 = ssub.s32 %s1793_s19, %s2263_s26 }
  0x2e   : > { %s2234_s10 = scalar_select %p1986_p2, 1, 0 }
  0x2f   : > { %s2236_s12 = scalar_select %p1990_p4, 1, 0 }
  0x30   : > { %2235 = sst [smem:[#allocation24_spill]] %s2234_s10  ;;  %p1423_p5 = scmp.lt.s32.totalorder %s1797_s20, 4 }
  0x31   : > { %2237 = sst [smem:[#allocation25_spill]] %s2236_s12  ;;  %p51_p6 = scmp.eq.s32.totalorder %s50_s28, 0 }
  0x32   : > { %s463_s22 = sand.u32 1, %s1777_s15   ;;  %s1295_s17 = sshll.u32 %s1793_s19, 3 }
  0x33   : > { %s1294_s23 = sshll.u32 %s463_s22, 3  ;;  %s471_s27 = scalar_lea.hbm %s2188_s0, %s1295_s17 }
  0x34   : > { %s1999_s14 = scalar_select %p51_p6, %s1777_s15, %s53_s11  }
  0x35   : > { %s467_s18 = scalar_lea.vmem [#allocation3], %s1294_s23  ;;  %s473_s10 = sshll.u32 %s471_s27, 4  ;;  %s474_s10 = int_to_ptr.hbm [resolvable:$true] %s473_s10 }
  0x36   : > { %2238 = sst [smem:[#allocation26_spill]] %s1999_s14  ;;  %s475_s29 = sshll.u32 %s467_s18, 4  ;;  %s476_s29 = int_to_ptr.vmem [resolvable:$true] %s475_s29 }
  0x37   : > { %p1410_p7 = pnand %p1423_p5, %p1971_p9  ;;  %s482_s26 = sand.u32 1, %s1797_s20  }
  0x38   : > { %s464_s12 = scalar_lea.sflag [#allocation4], %s463_s22  ;;  %s488_s11 = scalar_lea.hbm %s2189_s1, %s1793_s19 }
  0x39   : > { %1412 = dma.hbm_to_vmem [thread:$0]  (!%p1410_p7), %s474_s10, 128, %s476_s29, %s464_s12  }
  0x3a   : > { %s485_s14 = scalar_lea.vmem [#allocation6], %s463_s22  ;;  %s490_s9 = sshll.u32 %s488_s11, 4  ;;  %s491_s9 = int_to_ptr.hbm [resolvable:$true] %s490_s9 }
  0x3b   : > { %s492_s15 = sshll.u32 %s485_s14, 4  ;;  %s483_s13 = scalar_lea.sflag [#allocation7], %s482_s26  ;;  %s493_s15 = int_to_ptr.vmem [resolvable:$true] %s492_s15 }
  0x3c   : > { %1415 = dma.hbm_to_vmem [thread:$0]  (!%p1410_p7), %s491_s9, 16, %s493_s15, %s483_s13  }
  0x3d   : > { %501 = sbr.rel (%p1937_p3) target bundleno = 1969 (0x7b1), region = 76  ;;  %s2015_s18 = sand.u32 (!%p1937_p3), 1, %s1773_s30  }
  0x3e   : > { %s1297_s29 = sshll.u32 (!%p1937_p3), %s2015_s18, 3  ;;  %s504_s27 = scalar_lea.sflag (!%p1937_p3), [#allocation4], %s2015_s18 }
  0x3f   : > { %s507_s8 = scalar_lea.vmem (!%p1937_p3), [#allocation3], %s1297_s29 }
  0x42   : > { %1748 = dma.done.wait (%p1980_p13), %s504_s27, 128  }
  0x43   : > { %1750 = vsyncadd (%p1980_p13), %s504_s27, 4294967168  ;;  %s513_s9 = sand.u32 1, %s1929_s21   ;;  %s516_s25 = scalar_lea.vmem [#allocation6], %s2015_s18 }
  0x44   : > { %s514_s15 = scalar_lea.sflag [#allocation7], %s513_s9 }
  0x45   : > { %1752 = dma.done.wait (%p1980_p13), %s514_s15, 16  }
  0x46   : > { %1754 = vsyncadd (%p1980_p13), %s514_s15, 4294967280 }
  0x47   : > { %1756 = dma.done.wait (%p67_p1), [#allocation7], 32  }
  0x48   : > { %1758 = vsyncadd (%p67_p1), [#allocation7], 4294967264 }
  0x49   : > { %1760 = dma.done.wait (%p67_p1), [#allocation10], 64  }
  0x4a   : > { %1762 = vsyncadd (%p67_p1), [#allocation10], 4294967232  ;;  %s2037_s26 = scalar_lea.vmem [#allocation12], %s1297_s29  ;;  %p1302_p3 = scmp.ne.s32.totalorder %s1781_s16, 0 }
  0x4c   : > { %585 = sbr.rel (%p1302_p3) target bundleno = 83 (0x53), region = 100 }
  0x51   : > { %v586_v0 = vld [vmem:[%s507_s8] sm:$0xff]  ;;  %vm587_vm0 = vcmask 261120  }
  0x52   : > { %588 = vst.msk [vmem:[#allocation2] sm:$0xff] %vm587_vm0, %v586_v0 }
  0x53 PF: > { %s2041_s7 = sshll.u32 %s1781_s16, 4  ;;  %s596_s21 = scalar_lea.vmem [#allocation8], %s1781_s16  ;;  %vm653_vm1 = vcmask 261120   ;;  %vm689_vm2 = vcmask 64512   ;;  %v1507_v34 = vld [vmem:[%s516_s25] ss:$0 sm:$0xff] }
  0x54   : > { %s591_s12 = scalar_lea.vmem %s2190_s2, %s2041_s7  ;;  %v1506_v5 = vld [vmem:[%s596_s21] ss:$0 sm:$0xff]  ;;  %s1804_s22 = smov 104   ;;  %vm833_vm3 = vcmask 1043456   ;;  %vm934_vm4 = vcmask 130048   ;;  %vm936_vm5 = vcmask 195584  }
  0x55   : > { %v1369_v1 = vld [vmem:[%s591_s12 + $0x8] sm:$0xff]  ;;  %v1368_v2 = vld [vmem:[%s591_s12] sm:$0xff]  ;;  %s1805_s23 = smov 120   ;;  %s1806_s14 = smov 112   ;;  %vm1069_vm10 = vcmask 523264  }
  0x56   : > { %663 = vmatpush.bf16.msra.mxu0 %v1369_v1  ;;  %s1807_s17 = smov 96   ;;  %s1808_s24 = smov 64  }
  0x57   : > { %s1809_s28 = smov 24   ;;  %s1810_s11 = smov 8  }
  0x58   : > { %s604_s27 = scalar_lea.vmem %s2193_s5, %s1781_s16  ;;  %s1811_s8 = smov 16  }
  0x59   : > { %v2048_v3 = vld [vmem:[#allocation2] sm:$0xff]  ;;  %s599_s25 = scalar_lea.vmem %s2192_s4, %s2041_s7  ;;  %s606_s12 = scalar_lea.vmem %s2194_s6, %s1781_s16 }
  0x5a   : > { %v637_v4 = vpack.c.bf16 %v2048_v3, %v2048_v3  ;;  %664 = vmatpush.bf16.msra.mxu0 %v1368_v2  ;;  %s608_s21 = scalar_lea.vmem [#allocation9], %s1781_s16  ;;  %s1376_s29 = sshll.u32 %s1781_s16, 5 }
  0x5b   : > { %s2241_s9 = sld [smem:[#allocation31_spill]]  ;;  %p1361_p1 = scmp.ge.s32.totalorder %s1781_s16, 1 }
  0x5d   : > { %1317 = vmatmul.msk.bf16.vlgmr.msra.gmra.mxu0 %vm653_vm1, %v637_v4 }
  0x61   : > { %s620_s15 = scalar_lea.vmem %s2241_s9, %s1376_s29  ;;  %s633_s29 = scalar_lea.vmem [#allocation11], %s1781_s16 }
  0xda   : > { %v666_v6 = vpop.f32.mrf.mxu0 }
  0xdb   : > { %v667_v7 = vadd.f32 %v1506_v5, %v666_v6 }
  0xdd   : > { %677 = vrot.lane.b32.xlu1 %v667_v7, %s1804_s22  ;;  %671 = vrot.lane.b32.xlu0 %v667_v7, %s1805_s23  ;;  %v680_v9 = vpack.c.bf16 %v667_v7, %v667_v7  ;;  %s2242_s22 = sld [smem:[#allocation32_spill]] }
  0xdf   : > { %v685_v10 = vunpack.c.l.b16 %v680_v9 }
  0xe1   : > { %v686_v11 = vpack.c.b16 %v685_v10, %v685_v10 }
  0xe2   : > { %v668_v8 = vpop.f32.mrf.mxu0 }
  0xe3   : > { %s629_s23 = scalar_lea.vmem %s2242_s22, %s1781_s16 }
  0xe5   : > { %674 = vrot.lane.b32.xlu0 %v667_v7, %s1806_s14  ;;  %s2239_s14 = sld [smem:[#allocation30_spill]] }
  0xed   : > { %687 = vrot.lane.b32.xlu0 %v686_v11, %s1807_s17 }
 0x14f   : > { %v672_v12 = vpop.permute.xlu0 %671  ;;  %v678_v18 = vpop.permute.xlu1 %677 }
 0x150   : > { %v681_v13 = vpack.c.bf16 %v672_v12, %v672_v12  ;;  %v683_v20 = vpack.c.bf16 %v678_v18, %v678_v18 }
 0x152   : > { %v710_v14 = vunpack.c.l.b16 %v681_v13  ;;  %v758_v23 = vunpack.c.l.b16 %v683_v20 }
 0x154   : > { %v711_v15 = vpack.c.b16 %v710_v14, %v710_v14  ;;  %v759_v25 = vpack.c.b16 %v758_v23, %v758_v23 }
 0x156   : > { %712 = vrot.lane.b32.xlu1 %v711_v15, %s1807_s17 }
 0x157   : > { %v675_v16 = vpop.permute.xlu0 %674 }
 0x158   : > { %v682_v17 = vpack.c.bf16 %v675_v16, %v675_v16 }
 0x15a   : > { %v734_v19 = vunpack.c.l.b16 %v682_v17 }
 0x15c   : > { %v735_v21 = vpack.c.b16 %v734_v19, %v734_v19 }
 0x15e   : > { %736 = vrot.lane.b32.xlu2 %v735_v21, %s1807_s17 }
 0x15f   : > { %v688_v22 = vpop.permute.xlu0 %687 }
 0x160   : > { %v694_v24 = vsel %vm689_vm2, %v688_v22, 0 }
 0x161   : > { %703 = vmatpush.bf16.xpose.msra.mxu1 %v694_v24 }
 0x166   : > { %760 = vrot.lane.b32.xlu2 %v759_v25, %s1807_s17  ;;  %s616_s17 = scalar_lea.vmem %s2239_s14, %s1781_s16 }
 0x168   : > { %1318 = vmatmul.msk.bf16.vlgmr.msra.gmra.mxu1 %vm689_vm2, %v680_v9 }
 0x1b8   : > { %v737_v26 = vpop.permute.xlu2 %736 }
 0x1b9   : > { %v742_v27 = vsel %vm689_vm2, %v737_v26, 0 }
 0x1ba   : > { %751 = vmatpush.bf16.xpose.msra.mxu3 %v742_v27 }
 0x1c0   : > { %v761_v28 = vpop.permute.xlu2 %760 }
 0x1c1   : > { %1320 = vmatmul.msk.bf16.vlgmr.msra.gmra.mxu3 %vm689_vm2, %v682_v17  ;;  %v766_v29 = vsel %vm689_vm2, %v761_v28, 0 }
 0x1c2   : > { %775 = vmatpush.bf16.xpose.msrb.mxu0 %v766_v29 }
 0x1c8   : > { %v713_v30 = vpop.permute.xlu1 %712 }
 0x1c9   : > { %1321 = vmatmul.msk.bf16.vlgmr.msrb.gmra.mxu0 %vm689_vm2, %v683_v20  ;;  %v718_v31 = vsel %vm689_vm2, %v713_v30, 0 }
 0x1ca   : > { %727 = vmatpush.bf16.xpose.msra.mxu2 %v718_v31 }
 0x1d1   : > { %1319 = vmatmul.msk.bf16.vlgmr.msra.gmra.mxu2 %vm689_vm2, %v681_v13 }
 0x1e5   : > { %v705_v32 = vpop.f32.mrf.mxu1 }
 0x1e6   : > { %v784_v47 = vadd.f32 %v1507_v34, %v705_v32 }
 0x1e8   : > { %v788_v48 = vsel %vm689_vm2, %v784_v47, -inf }
 0x1ed   : > { %v707_v33 = vpop.f32.mrf.mxu1 }
 0x244   : > { %v753_v35 = vpop.f32.mrf.mxu3 }
 0x245   : > { %v786_v36 = vadd.f32 %v1507_v34, %v753_v35  ;;  %v1372_v35 = vld [vmem:[%s599_s25 + $0x8] sm:$0xff] }
 0x246   : > { %v777_v37 = vpop.f32.mrf.mxu0 }
 0x247   : > { %v787_v38 = vadd.f32 %v1507_v34, %v777_v37  ;;  %v794_v39 = vsel %vm689_vm2, %v786_v36, -inf }
 0x248   : > { %795 = vmax.xlane.f32.xlu2 %v794_v39 }
 0x249   : > { %v797_v40 = vsel %vm689_vm2, %v787_v38, -inf }
 0x24a   : > { %798 = vmax.xlane.f32.xlu0 %v797_v40 }
 0x24c   : > { %v755_v41 = vpop.f32.mrf.mxu3 }
 0x24e   : > { %v779_v42 = vpop.f32.mrf.mxu0 }
 0x254   : > { %v729_v43 = vpop.f32.mrf.mxu2 }
 0x255   : > { %v785_v44 = vadd.f32 %v1507_v34, %v729_v43 }
 0x257   : > { %v791_v45 = vsel %vm689_vm2, %v785_v44, -inf }
 0x258   : > { %792 = vmax.xlane.f32.xlu1 %v791_v45 }
 0x25c   : > { %v731_v46 = vpop.f32.mrf.mxu2 }
 0x25e   : > { %892 = vrot.lane.b32.xlu0 %v759_v25, %s1808_s24 }
 0x260   : > { %850 = vrot.lane.b32.xlu2 %v711_v15, %s1808_s24 }
 0x271   : > { %871 = vrot.lane.b32.xlu1 %v735_v21, %s1808_s24 }
 0x279   : > { %828 = vrot.lane.b32.xlu1 %v686_v11, %s1808_s24 }
 0x289   : > { %789 = vmax.xlane.f32.xlu2 %v788_v48 }
 0x2bb   : > { %v796_v49 = vpop.xlane.xlu2 %795 }
 0x2bc   : > { %v802_v50 = vsub.f32 %v786_v36, %v796_v49  ;;  %v1371_v36 = vld [vmem:[%s599_s25] sm:$0xff] }
 0x2bd   : > { %v799_v51 = vpop.xlane.xlu0 %798 }
 0x2be   : > { %v808_v52 = vmul.f32 1.442695, %v802_v50  ;;  %v803_v53 = vsub.f32 %v787_v38, %v799_v51 }
 0x2c0   : > { %1515 = vpow2.f32 %v808_v52  ;;  %v810_v54 = vmul.f32 1.442695, %v803_v53  ;;  %v1812_v53 = vmov 32.0  }
 0x2c2   : > { %1517 = vpow2.f32 %v810_v54 }
 0x2c3   : > { %v851_v55 = vpop.permute.xlu2 %850 }
 0x2c4   : > { %v856_v56 = vsel %vm833_vm3, %v851_v55, 0 }
 0x2c5   : > { %865 = vmatpush.bf16.msrb.mxu2 %v856_v56 }
 0x2c6   : > { %v1516_v57 = vpop.eup %1515 }
 0x2c7   : > { %v818_v58 = vsel %vm689_vm2, %v1516_v57, 0.0  ;;  %v826_v9 = vpack.c.bf16 %v1516_v57, %v1516_v57 }
 0x2c8   : > { %v1518_v59 = vpop.eup %1517  ;;  %819 = vadd.xlane.f32.xlu1 %v818_v58 }
 0x2c9   : > { %v821_v60 = vsel %vm689_vm2, %v1518_v59, 0.0  ;;  %v827_v2 = vpack.c.bf16 %v1518_v59, %v1518_v59 }
 0x2ca   : > { %822 = vadd.xlane.f32.xlu2 %v821_v60 }
 0x2cb   : > { %v793_v61 = vpop.xlane.xlu1 %792 }
 0x2cc   : > { %v801_v62 = vsub.f32 %v785_v44, %v793_v61 }
 0x2ce   : > { %v806_v63 = vmul.f32 1.442695, %v801_v62 }
 0x2d0   : > { %1519 = vpow2.f32 %v806_v63  ;;  %v893_v0 = vpop.permute.xlu0 %892 }
 0x2d1   : > { %v898_v1 = vsel %vm833_vm3, %v893_v0, 0 }
 0x2d2   : > { %907 = vmatpush.bf16.msra.mxu0 %v898_v1 }
 0x2d5   : > { %1325 = vmatmul.msk.bf16.vlgmr.msra.gmra.mxu0 %vm689_vm2, %v827_v2  ;;  %v1380_v2 = vld [vmem:[%s620_s15 + $0x18] sm:$0xff] }
 0x2d6   : > { %v1520_v4 = vpop.eup %1519 }
 0x2d7   : > { %v815_v5 = vsel %vm689_vm2, %v1520_v4, 0.0  ;;  %v825_v6 = vpack.c.bf16 %v1520_v4, %v1520_v4 }
 0x2d8   : > { %816 = vadd.xlane.f32.xlu0 %v815_v5 }
 0x2d9   : > { %1323 = vmatmul.msk.bf16.vlgmr.msrb.gmra.mxu2 %vm689_vm2, %v825_v6  ;;  %v1379_v6 = vld [vmem:[%s620_s15 + $0x10] sm:$0xff] }
 0x2e3   : > { %v872_v7 = vpop.permute.xlu1 %871 }
 0x2e4   : > { %v877_v8 = vsel %vm833_vm3, %v872_v7, 0 }
 0x2e5   : > { %886 = vmatpush.bf16.msrb.mxu3 %v877_v8 }
 0x2e8   : > { %1324 = vmatmul.msk.bf16.vlgmr.msrb.gmra.mxu3 %vm689_vm2, %v826_v9 }
 0x2e9   : > { %1077 = vmatpush.bf16.msra.mxu3 %v1380_v2 }
 0x2eb   : > { %v829_v10 = vpop.permute.xlu1 %828 }
 0x2ec   : > { %v835_v11 = vsel %vm833_vm3, %v829_v10, 0 }
 0x2ed   : > { %844 = vmatpush.bf16.msrb.mxu1 %v835_v11  ;;  %1078 = vmatpush.bf16.msra.mxu3 %v1379_v6 }
 0x2f1   : > { %963 = vmatpush.bf16.msra.mxu1 %v1372_v35 }
 0x2f5   : > { %964 = vmatpush.bf16.msra.mxu1 %v1371_v36 }
 0x2fc   : > { %v790_v12 = vpop.xlane.xlu2 %789 }
 0x2fd   : > { %v800_v13 = vsub.f32 %v784_v47, %v790_v12  ;;  %v1508_v47 = vld [vmem:[%s604_s27] ss:$0 sm:$0xff] }
 0x2ff   : > { %v804_v14 = vmul.f32 1.442695, %v800_v13 }
 0x301   : > { %1521 = vpow2.f32 %v804_v14  ;;  %v1509_v14 = vld [vmem:[%s606_s12] ss:$0 sm:$0xff] }
 0x307   : > { %v1522_v15 = vpop.eup %1521 }
 0x308   : > { %v812_v16 = vsel %vm689_vm2, %v1522_v15, 0.0  ;;  %v824_v17 = vpack.c.bf16 %v1522_v15, %v1522_v15 }
 0x309   : > { %813 = vadd.xlane.f32.xlu0 %v812_v16  ;;  %v1510_v16 = vld [vmem:[%s608_s21] ss:$0 sm:$0xff] }
 0x30a   : > { %1322 = vmatmul.msk.bf16.vlgmr.msrb.gmra.mxu1 %vm689_vm2, %v824_v17 }
 0x33b   : > { %v820_v27 = vpop.xlane.xlu1 %819 }
 0x33d   : > { %v823_v18 = vpop.xlane.xlu2 %822 }
 0x33e   : > { %1523 = vrcp.f32 %v823_v18 }
 0x344   : > { %v1524_v19 = vpop.eup %1523 }
 0x34b   : > { %v817_v21 = vpop.xlane.xlu0 %816 }
 0x34c   : > { %1525 = vrcp.f32 %v817_v21  ;;  %v1378_v21 = vld [vmem:[%s620_s15 + $0x8] sm:$0xff] }
 0x34d   : > { %1527 = vrcp.f32 %v820_v27  ;;  %1079 = vmatpush.bf16.msra.mxu3 %v1378_v21 }
 0x352   : > { %v909_v20 = vpop.f32.mrf.mxu0  ;;  %v1526_v24 = vpop.eup %1525 }
 0x353   : > { %v920_v22 = vmul.f32 %v1524_v19, %v909_v20  ;;  %v1528_v29 = vpop.eup %1527 }
 0x355   : > { %930 = vrot.lane.b32.xlu0 %v920_v22, %s1809_s28  ;;  %v1377_v22 = vld [vmem:[%s620_s15] sm:$0xff] }
 0x356   : > { %1080 = vmatpush.bf16.msra.mxu3 %v1377_v22 }
 0x35a   : > { %v911_v23 = vpop.f32.mrf.mxu0 }
 0x35b   : > { %v1511_v23 = vld [vmem:[%s616_s17] ss:$0 sm:$0xff] }
 0x35c   : > { %v867_v25 = vpop.f32.mrf.mxu2 }
 0x35d   : > { %v918_v26 = vmul.f32 %v1526_v24, %v867_v25 }
 0x35f   : > { %922 = vrot.lane.b32.xlu2 %v918_v26, %s1810_s11  ;;  %s2240_s11 = sld [smem:[#allocation29_spill]] }
 0x364   : > { %v869_v28 = vpop.f32.mrf.mxu2 }
 0x365   : > { %s611_s13 = scalar_lea.vmem %s2240_s11, %s2041_s7  ;;  %s2243_s11 = sld [smem:[#allocation33_spill]] }
 0x366   : > { %v1375_v0 = vld [vmem:[%s611_s13 + $0x8] sm:$0xff]  ;;  %v1374_v1 = vld [vmem:[%s611_s13] sm:$0xff] }
 0x367   : > { %1033 = vmatpush.bf16.msra.mxu2 %v1375_v0 }
 0x36b   : > { %v888_v30 = vpop.f32.mrf.mxu3  ;;  %1034 = vmatpush.bf16.msra.mxu2 %v1374_v1  ;;  %s631_s13 = scalar_lea.vmem %s2243_s11, %s1781_s16 }
 0x36c   : > { %v919_v31 = vmul.f32 %v1528_v29, %v888_v30  ;;  %v1512_v29 = vld [vmem:[%s629_s23] ss:$0 sm:$0xff] }
 0x36e   : > { %926 = vrot.lane.b32.xlu1 %v919_v31, %s1811_s8 }
 0x373   : > { %v890_v32 = vpop.f32.mrf.mxu3 }
 0x37c   : > { %v814_v37 = vpop.xlane.xlu0 %813 }
 0x37d   : > { %1529 = vrcp.f32 %v814_v37 }
 0x37e   : > { %1531 = vrcp.f32 %v1812_v53 }
 0x383   : > { %v1530_v38 = vpop.eup %1529 }
 0x384   : > { %v1532_v54 = vpop.eup %1531 }
 0x385   : > { %v975_v55 = vmul.f32 32.0, %v1532_v54  ;;  %vm979_vm6 = vweird.f32 %v1532_v54 }
 0x387   : > { %v846_v33 = vpop.f32.mrf.mxu1  ;;  %v976_v56 = vsub.f32 1.0, %v975_v55 }
 0x388   : > { %v917_v40 = vmul.f32 %v1530_v38, %v846_v33 }
 0x389   : > { %v977_v57 = vmul.f32 %v1532_v54, %v976_v56 }
 0x38b   : > { %v978_v58 = vadd.f32 %v1532_v54, %v977_v57 }
 0x38d   : > { %v2096_v59 = vsel %vm979_vm6, %v1532_v54, %v978_v58 }
 0x38f   : > { %v848_v34 = vpop.f32.mrf.mxu1 }
 0x3b9   : > { %v923_v39 = vpop.permute.xlu2 %922 }
 0x3ba   : > { %v933_v41 = vsel %vm689_vm2, %v917_v40, %v923_v39 }
 0x3c7   : > { %v931_v43 = vpop.permute.xlu0 %930 }
 0x3e0   : > { %v927_v42 = vpop.permute.xlu1 %926 }
 0x3e1   : > { %v935_v44 = vsel %vm934_vm4, %v933_v41, %v927_v42 }
 0x3e2   : > { %v937_v45 = vsel %vm936_vm5, %v935_v44, %v931_v43 }
 0x3e3   : > { %v938_v46 = vpack.c.bf16 %v937_v45, %v937_v45 }
 0x3e5   : > { %1334 = vmatmul.msk.bf16.vlgmr.msra.gmra.mxu1 %vm653_vm1, %v938_v46 }
 0x462   : > { %v966_v48 = vpop.f32.mrf.mxu1 }
 0x463   : > { %v967_v49 = vadd.f32 %v1508_v47, %v966_v48 }
 0x465   : > { %v970_v50 = vadd.f32 %v967_v49, %v2048_v3  ;;  %v1513_v49 = vld [vmem:[%s631_s13] ss:$0 sm:$0xff] }
 0x467   : > { %v971_v51 = vsel %vm653_vm1, %v970_v50, 0.0 }
 0x468   : > { %972 = vadd.xlane.f32.xlu2 %v971_v51  ;;  %v1514_v51 = vld [vmem:[%s633_s29] ss:$0 sm:$0xff] }
 0x46a   : > { %v968_v52 = vpop.f32.mrf.mxu1 }
 0x4db   : > { %v973_v60 = vpop.xlane.xlu2 %972 }
 0x4dc   : > { %v981_v3 = vmul.f32 %v2096_v59, %v973_v60 }
 0x4de   : > { %v982_v61 = vsub.f32 %v970_v50, %v981_v3 }
 0x4e0   : > { %v983_v62 = vmul.f32 %v982_v61, %v982_v61 }
 0x4e2   : > { %v984_v63 = vsel %vm653_vm1, %v983_v62, 0.0 }
 0x4e3   : > { %985 = vadd.xlane.f32.xlu0 %v984_v63 }
 0x556   : > { %v986_v4 = vpop.xlane.xlu0 %985 }
 0x557   : > { %v987_v5 = vmul.f32 %v986_v4, %v2096_v59 }
 0x559   : > { %v988_v7 = vadd.f32 1e-05, %v987_v5 }
 0x55b   : > { %1533 = vrsqrt.f32 %v988_v7  ;;  %vm995_vm8 = vweird.f32 %v988_v7 }
 0x561   : > { %v1534_v8 = vpop.eup %1533 }
 0x562   : > { %v990_v9 = vmul.f32 %v1534_v8, %v988_v7  ;;  %vm996_vm7 = vweird.f32 %v1534_v8 }
 0x563   : > { %vm997_vm9 = vmor %vm995_vm8, %vm996_vm7 }
 0x564   : > { %v991_v10 = vmul.f32 %v1534_v8, %v990_v9 }
 0x566   : > { %v992_v11 = vmul.f32 0.5, %v991_v10 }
 0x568   : > { %v993_v12 = vsub.f32 1.5, %v992_v11 }
 0x56a   : > { %v994_v13 = vmul.f32 %v1534_v8, %v993_v12 }
 0x56c   : > { %v998_v15 = vsel %vm997_vm9, %v1534_v8, %v994_v13 }
 0x56d   : > { %v999_v17 = vmul.f32 %v998_v15, %v982_v61 }
 0x56f   : > { %v1003_v18 = vmul.f32 %v1509_v14, %v999_v17 }
 0x571   : > { %v1007_v19 = vadd.f32 %v1510_v16, %v1003_v18 }
 0x573   : > { %v1008_v20 = vpack.c.bf16 %v1007_v19, %v1007_v19 }
 0x575   : > { %1343 = vmatmul.msk.bf16.vlgmr.msra.gmra.mxu2 %vm653_vm1, %v1008_v20 }
 0x5f8   : > { %v1036_v24 = vpop.f32.mrf.mxu2 }
 0x5f9   : > { %v1037_v25 = vadd.f32 %v1511_v23, %v1036_v24 }
 0x5fb   : > { %v1040_v26 = vmax.f32 %v1037_v25, 0.0 }
 0x5fd   : > { %v1041_v27 = vpack.c.bf16 %v1040_v26, %v1040_v26 }
 0x5ff   : > { %1360 = vmatmul.msk.bf16.vlgmr.msra.gmra.mxu3 %vm1069_vm10, %v1041_v27 }
 0x600   : > { %v1038_v28 = vpop.f32.mrf.mxu2 }
 0x682   : > { %v1082_v30 = vpop.f32.mrf.mxu3 }
 0x683   : > { %v1083_v31 = vadd.f32 %v1512_v29, %v1082_v30 }
 0x685   : > { %v1086_v32 = vadd.f32 %v1083_v31, %v1007_v19 }
 0x687   : > { %v1087_v33 = vsel %vm653_vm1, %v1086_v32, 0.0 }
 0x688   : > { %1088 = vadd.xlane.f32.xlu1 %v1087_v33 }
 0x68a   : > { %v1084_v34 = vpop.f32.mrf.mxu3 }
 0x6fb   : > { %v1089_v35 = vpop.xlane.xlu1 %1088 }
 0x6fc   : > { %v1090_v36 = vmul.f32 %v1089_v35, %v2096_v59 }
 0x6fe   : > { %v1091_v37 = vsub.f32 %v1086_v32, %v1090_v36 }
 0x700   : > { %v1092_v38 = vmul.f32 %v1091_v37, %v1091_v37 }
 0x702   : > { %v1093_v39 = vsel %vm653_vm1, %v1092_v38, 0.0 }
 0x703   : > { %1094 = vadd.xlane.f32.xlu2 %v1093_v39 }
 0x776   : > { %v1095_v40 = vpop.xlane.xlu2 %1094 }
 0x777   : > { %v1096_v41 = vmul.f32 %v1095_v40, %v2096_v59 }
 0x779   : > { %v1097_v42 = vadd.f32 1e-05, %v1096_v41 }
 0x77b   : > { %1535 = vrsqrt.f32 %v1097_v42  ;;  %vm1104_vm12 = vweird.f32 %v1097_v42 }
 0x781   : > { %v1536_v43 = vpop.eup %1535 }
 0x782   : > { %v1099_v44 = vmul.f32 %v1536_v43, %v1097_v42  ;;  %vm1105_vm11 = vweird.f32 %v1536_v43 }
 0x783   : > { %vm1106_vm13 = vmor %vm1104_vm12, %vm1105_vm11 }
 0x784   : > { %v1100_v45 = vmul.f32 %v1536_v43, %v1099_v44 }
 0x786   : > { %v1101_v46 = vmul.f32 0.5, %v1100_v45 }
 0x788   : > { %v1102_v47 = vsub.f32 1.5, %v1101_v46 }
 0x78a   : > { %v1103_v48 = vmul.f32 %v1536_v43, %v1102_v47 }
 0x78c   : > { %v1107_v50 = vsel %vm1106_vm13, %v1536_v43, %v1103_v48 }
 0x78d   : > { %v1108_v52 = vmul.f32 %v1107_v50, %v1091_v37  ;;  %1120 = sbr.rel (%p1361_p1) target bundleno = 1940 (0x794), region = 104 }
 0x78f   : > { %v1112_v53 = vmul.f32 %v1513_v49, %v1108_v52 }
 0x791   : > { %v1116_v54 = vadd.f32 %v1514_v51, %v1112_v53 }
 0x793   : > { %1121 = vst.msk [vmem:[#allocation2] sm:$0xff] %vm653_vm1, %v1116_v54 }
 0x794 PF: > { %p1362_p8 = scmp.ne.s32.totalorder %s1781_s16, 1 }
 0x796   : > { %1125 = sbr.rel (%p1362_p8) target bundleno = 1948 (0x79c), region = 108 }
 0x79b   : > { %1126 = vst.msk [vmem:[%s2037_s26] sm:$0xff] %vm653_vm1, %v1116_v54 }
 0x79c PF: > { %s2244_s17 = sld [smem:[#allocation20_spill]]  ;;  %s1140_s3 = sshll.u32 %s2037_s26, 4  ;;  %s1141_s3 = int_to_ptr.vmem [resolvable:$true] %s1140_s3 }
 0x79d   : > { %s2246_s7 = sld [smem:[#allocation35_spill]]  ;;  %s1128_s22 = scalar_lea.sflag [#allocation5], %s2015_s18 }
 0x7a2   : > { %s1364_s8 = sshll.u32 %s2244_s17, 3 }
 0x7a3   : > { %s1138_s25 = scalar_lea.hbm %s2246_s7, %s1364_s8  ;;  %s1707_s21 = scalar_lea.hbm %s2246_s7, 16 }
 0x7a4   : > { %s1142_s10 = sshll.u32 %s1138_s25, 4  ;;  %s1143_s10 = int_to_ptr.hbm [resolvable:$true] %s1142_s10 }
 0x7a5   : > { %s1701_s16 = sshra.s32 %s1143_s10, 4  ;;  %s1702_s16 = int_to_ptr.hbm [resolvable:$true] %s1701_s16 }
 0x7a6   : > { %s1703_s23 = scalar_lea.hbm %s1702_s16, 8  ;;  %p1708_p12 = scmp.lt.s32.totalorder %s1702_s16, %s2246_s7 }
 0x7a7   : > { %p1704_p9 = scmp.ne.s32.totalorder %s1702_s16, %s1703_s23  ;;  %p1709_p13 = scmp.lt.s32.totalorder %s1707_s21, %s1703_s23 }
 0x7a9   : > { %p1705_p10 = pnand %p1704_p9, %p1986_p2  ;;  %p1710_p0 = por %p1709_p13, %p1708_p12 }
 0x7ab   : > { %p1706_p11 = pneg %p1705_p10 }
 0x7ad   : > { %p1711_p5 = pnand %p1710_p0, %p1706_p11 }
 0x7af   : > { %1714 = shalt.err (!%p1711_p5)
}
 0x7b0   : > { %1397 = dma.vmem_to_hbm [thread:$0]  (%p1986_p2), %s1141_s3, 128, %s1143_s10, %s1128_s22  }
 0x7b1 PF: > { %s2247_s18 = sld [smem:[#allocation18_spill]]  ;;  %p1427_p6 = scmp.ge.s32.totalorder %s1797_s20, 2 }
 0x7b3   : > { %p1417_p7 = pnand %p1427_p6, %p1990_p4 }
 0x7b5   : > { %p1418_p3 = pneg %p1417_p7 }
 0x7b7   : > { %s1154_s13 = sand.u32 1, %s2247_s18  }
 0x7b8   : > { %s1155_s29 = scalar_lea.sflag [#allocation5], %s1154_s13 }
 0x7b9   : > { %1764 = dma.done.wait (%p1418_p3), %s1155_s29, 128  }
 0x7ba   : > { %1766 = vsyncadd (%p1418_p3), %s1155_s29, 4294967168  ;;  %s34_s20 = sadd.s32 1, %s1797_s20   ;;  %s2249_s17 = sld [smem:[#allocation19_spill]] }
 0x7bb   : > { %p31_p1 = scmp.ge.s32.totalorder %s34_s20, 6   ;;  %s2250_s15 = sld [smem:[#allocation26_spill]] }
 0x7bc   : > { %s2251_s16 = sld [smem:[#allocation21_spill]]  ;;  %s2254_s29 = smov %s1773_s30 }
 0x7bd   : > { %s2252_s18 = sld [smem:[#allocation22_spill]] }
 0x7be   : > { %s2253_s27 = sld [smem:[#allocation23_spill]] }
 0x7c0   : > { %s2255_s30 = smov %s2249_s17  ;;  %s2256_s17 = smov %s1793_s19 }
 0x7c1   :  { %33 = sbr.rel (!%p31_p1) target bundleno = 20 (0x14), region = 170 }
 0x7c4   : > { %s2257_s19 = smov %s2253_s27 }
 0x7c6   :  { %1161 = vsyncpa [#allocation4], 1 }
 0x7c7   :  { %1163 = vsyncpa [#allocation4 + $0x1], 1 }
 0x7c8   :  { %1164 = vsyncpa [#allocation7], 1 }
 0x7c9   :  { %1166 = vsyncpa [#allocation7 + $0x1], 1 }
 0x7ca   :  { %1167 = vsyncpa [#allocation10], 1 }
 0x7cb   :  { %1168 = vsyncpa [#allocation5], 1 }
 0x7cc   :  { %1170 = vsyncpa [#allocation5 + $0x1], 1 }

</bundles_post_ra>
